<compile_context>
chip_gen: v7x
topology: tpu7x:2x2x1
jax: 0.10.0
libtpu: 0.0.40
codegen_flags: <defaults>
</compile_context>

<pallas_src>
import numpy as np
import jax
import jax.numpy as jnp
from jax.experimental import pallas as pl
from jax.experimental.pallas import tpu as pltpu

# ---- LGA hyperparameters: LGA(out_dim=24, alpha=1000, beta=100,
#      block_num=2, dim_expansion=1, type='mn40') ----
OUT_DIM   = 24
ALPHA     = 1000.0
BETA      = 100.0
BLOCK_NUM = 2
C_IN      = OUT_DIM          # dim_expansion==1 -> expand=2 -> knn_x has out_dim channels
FEAT_DIM  = OUT_DIM // 6     # PosE_Geo: out_dim // (in_dim*2), in_dim=3
D_HALF    = OUT_DIM // 2
BN_EPS    = 1e-5


# ----------------------------------------------------------------------------
# Pallas kernel (channels-first): Linear1 (+BN, ReLU), PosE_Geo, BLOCK_NUM
# residual Linear2 blocks -- all fused, output written directly in NCHW order.
# ----------------------------------------------------------------------------
def _lga_kernel(xr, kxr, lcr, er, wmr, w2br, bvr, cselr, o_ref):
    D, Dh = OUT_DIM, D_HALF
    f32 = jnp.float32
    dnT = (((1,), (1,)), ((), ()))              # contract last dims: A @ B^T

    x  = xr[0]                                  # (TN, C)  knn features (channels-last block)
    kx = kxr[0]                                 # (TN, 3)  knn coordinates
    lc = lcr[0]                                 # (2D, TG) per-group [lin1-lc+bias | PosE centre]

    # Expand per-group columns to per-point columns with one 0/1 matmul (MXU slack).
    lce  = jnp.dot(lc, er[...], preferred_element_type=f32)          # (2D, TN)
    y_lc = lce[:D]
    a_lc = lce[D:]

    # Linear1 (knn half) with BN folded: (D, C) x (TN, C)^T -> (D, TN), then ReLU.
    y = jax.lax.dot_general(wmr[0:D, :], x, dnT, preferred_element_type=f32)
    y = jnp.maximum(y + y_lc, 0.0)                                   # (D, TN)

    # PosE_Geo: arg[d, n] = freq[d] * (knn_xyz[n, coord(d)] - centre[g(n), coord(d)]).
    # cos rows are produced via sin(x + pi/2) -> a single transcendental pass.
    arg = jax.lax.dot_general(cselr[...], kx, dnT, preferred_element_type=f32) - a_lc
    pe  = jnp.sin(arg + bvr[2 * BLOCK_NUM * D:(2 * BLOCK_NUM + 1) * D, :])   # (D, TN)
    w   = (y + pe) * pe                                              # knn_x_w

    # BLOCK_NUM residual Linear2 blocks (BN folded into the 1x1 convs).
    for i in range(BLOCK_NUM):
        wa = wmr[D * (i + 1):D * (i + 1) + Dh, :]                    # (Dh, D)
        ba = bvr[2 * D * i:2 * D * i + Dh, :]                        # (Dh, 1)
        wb = w2br[i]                                                 # (D, Dh)
        bb = bvr[D * (2 * i + 1):D * (2 * i + 2), :]                 # (D, 1)
        h = jnp.maximum(jnp.dot(wa, w, preferred_element_type=f32) + ba, 0.0)
        z = jnp.dot(wb, h, preferred_element_type=f32) + bb
        w = jnp.maximum(z + w, 0.0)

    o_ref[0] = w.astype(o_ref.dtype)                                 # (D, TN) -> NCHW slab


# ----------------------------------------------------------------------------
# Tile selection: lane-dense spatial tiles that cover whole groups.
# ----------------------------------------------------------------------------
def _pick_tile(N, G, K, target=1024):
    best = None
    t = 128
    while t <= min(N, target):
        if N % t == 0 and t % K == 0:
            tg = t // K
            if tg % 128 == 0 or tg == G:     # keep the per-group block lane-legal
                best = t
        t += 128
    return best if best is not None else N   # ragged fallback: whole extent


# ----------------------------------------------------------------------------
# Wrapper
# ----------------------------------------------------------------------------
def lga_forward(lc_xyz, lc_x, knn_xyz, knn_x, p):
    B, G, K, C = knn_x.shape
    D, Dh = OUT_DIM, D_HALF
    N  = G * K
    TN = _pick_tile(N, G, K)
    TG = TN // K
    nb = N // TN

    # --- glue: 'mn40' normalization statistics (global scalar std) ---
    # TODO(synk): the global unbiased std is a whole-tensor scalar reduction; it
    # is computed in plain JAX and folded into the PosE frequency table.
    delta = knn_xyz - lc_xyz[:, :, None, :]
    std   = jnp.std(delta, ddof=1)                       # torch.std is unbiased
    inv   = 1.0 / (std + 1e-5)

    # --- PosE channel tables: per-channel coordinate selector * frequency ---
    hi = jax.lax.Precision.HIGHEST
    feat_range = jnp.arange(FEAT_DIM, dtype=jnp.float32)
    dim_embed  = ALPHA ** (feat_range / FEAT_DIM)
    ch    = jnp.arange(D)
    inner = ch % (2 * FEAT_DIM)
    fidx  = jnp.where(inner < FEAT_DIM, inner, inner - FEAT_DIM)
    freq  = (BETA * inv) / dim_embed[fidx]                               # (D,)
    coord = ch // (2 * FEAT_DIM)
    csel_freq = jnp.where(coord[:, None] == jnp.arange(3)[None, :],
                          freq[:, None], 0.0).astype(jnp.float32)        # (D, 3)

    # --- tiny per-group tensors replacing the reference's (B,N,2C) concat:
    #     Linear1's lc_x half (+bias) and the PosE term of the group centre. ---
    lc_lin = jnp.einsum('bgc,dc->bdg', lc_x, p["w1l_cf"], precision=hi) \
             + p["b1"][None, :, None]                                    # (B, D, G)
    lc_pos = jnp.einsum('bgc,dc->bdg', lc_xyz, csel_freq, precision=hi)  # (B, D, G)
    lc_pack = jnp.concatenate([lc_lin, lc_pos], axis=1)                  # (B, 2D, G)

    # --- big tensors stay channels-last in HBM (free reshapes, no extra pass) ---
    knn_x_f   = knn_x.reshape(B, N, C)
    knn_xyz_f = knn_xyz.reshape(B, N, 3)

    # 0/1 group->point expansion matrix (compile-time constant, resident in VMEM).
    E = jnp.asarray(np.repeat(np.eye(TG, dtype=np.float32), K, axis=1))  # (TG, TN)

    const2 = lambda b, n: (0, 0)
    const3 = lambda b, n: (0, 0, 0)

    out = pl.pallas_call(
        _lga_kernel,
        out_shape=jax.ShapeDtypeStruct((B, D, N), jnp.float32),
        grid_spec=pltpu.PrefetchScalarGridSpec(
            num_scalar_prefetch=0,
            grid=(B, nb),
            in_specs=[
                pl.BlockSpec((1, TN, C),     lambda b, n: (b, n, 0)),    # knn_x
                pl.BlockSpec((1, TN, 3),     lambda b, n: (b, n, 0)),    # knn_xyz
                pl.BlockSpec((1, 2 * D, TG), lambda b, n: (b, 0, n)),    # per-group pack
                pl.BlockSpec((TG, TN),       const2),                    # expansion E
                pl.BlockSpec((D * (BLOCK_NUM + 1), D), const2),          # matrix slab
                pl.BlockSpec((BLOCK_NUM, D, Dh), const3),                # W2b stack
                pl.BlockSpec((D * (2 * BLOCK_NUM + 1), 1), const2),      # bias/phase slab
                pl.BlockSpec((D, 3),         const2),                    # csel * freq
            ],
            out_specs=pl.BlockSpec((1, D, TN), lambda b, n: (b, 0, n)),  # lane-dense NCHW
        ),
        compiler_params=pltpu.CompilerParams(
            dimension_semantics=("parallel", "parallel")),
    )(knn_x_f, knn_xyz_f, lc_pack, E,
      p["wslab"], p["w2b"], p["bslab"], csel_freq)

    # (B, D, N) is already NCHW up to a free, contiguous reshape.
    return out.reshape(B, D, G, K)


# ----------------------------------------------------------------------------
# Deterministic parameter init (shapes from the module __init__) + BN folding
# into channels-first, slab-packed kernel parameters.
# ----------------------------------------------------------------------------
def init_params(key):
    ks = jax.random.split(key, 17)
    rn = lambda k, s, scale=0.1: scale * jax.random.normal(k, s, jnp.float32)
    D, Dh, C = OUT_DIM, D_HALF, C_IN
    p = {}
    # Linear1Layer(out_dim*expand, out_dim, bias=False): Conv1d + BN1d + ReLU
    p["w1"]    = rn(ks[0], (2 * C, D))                 # conv1d weight, stored (in, out)
    p["bn1_g"] = 1.0 + rn(ks[1], (D,))
    p["bn1_b"] = rn(ks[2], (D,))
    p["bn1_m"] = rn(ks[3], (D,))
    p["bn1_v"] = 1.0 + 0.5 * jax.random.uniform(ks[4], (D,), dtype=jnp.float32)
    # BLOCK_NUM x Linear2Layer(out_dim, bias=True)
    p["w2a"]    = rn(ks[5], (BLOCK_NUM, D, Dh))
    p["c2a_b"]  = rn(ks[6], (BLOCK_NUM, Dh))
    p["bn2a_g"] = 1.0 + rn(ks[7], (BLOCK_NUM, Dh))
    p["bn2a_b"] = rn(ks[8], (BLOCK_NUM, Dh))
    p["bn2a_m"] = rn(ks[9], (BLOCK_NUM, Dh))
    p["bn2a_v"] = 1.0 + 0.5 * jax.random.uniform(ks[10], (BLOCK_NUM, Dh), dtype=jnp.float32)
    p["w2b"]    = rn(ks[11], (BLOCK_NUM, Dh, D))
    p["c2b_b"]  = rn(ks[12], (BLOCK_NUM, D))
    p["bn2b_g"] = 1.0 + rn(ks[13], (BLOCK_NUM, D))
    p["bn2b_b"] = rn(ks[14], (BLOCK_NUM, D))
    p["bn2b_m"] = rn(ks[15], (BLOCK_NUM, D))
    p["bn2b_v"] = 1.0 + 0.5 * jax.random.uniform(ks[16], (BLOCK_NUM, D), dtype=jnp.float32)
    return p


def fold_params(p):
    D, Dh, C = OUT_DIM, D_HALF, C_IN
    s1  = p["bn1_g"] / jnp.sqrt(p["bn1_v"] + BN_EPS)
    w1f = p["w1"] * s1[None, :]                          # (2C, D), BN folded
    b1  = p["bn1_b"] - s1 * p["bn1_m"]                   # (D,)
    w1k_cf = w1f[:C].T                                   # (D, C)  knn half, channels-first
    w1l_cf = w1f[C:].T                                   # (D, C)  lc  half, channels-first

    s2a    = p["bn2a_g"] / jnp.sqrt(p["bn2a_v"] + BN_EPS)
    w2a_cf = jnp.transpose(p["w2a"] * s2a[:, None, :], (0, 2, 1))   # (BN, Dh, D)
    b2a_f  = s2a * (p["c2a_b"] - p["bn2a_m"]) + p["bn2a_b"]         # (BN, Dh)

    s2b    = p["bn2b_g"] / jnp.sqrt(p["bn2b_v"] + BN_EPS)
    w2b_cf = jnp.transpose(p["w2b"] * s2b[:, None, :], (0, 2, 1))   # (BN, D, Dh)
    b2b_f  = s2b * (p["c2b_b"] - p["bn2b_m"]) + p["bn2b_b"]         # (BN, D)

    # Pack the D-column matrices into one slab (D-row slots, 8-aligned starts).
    padm  = jnp.zeros((D - Dh, D), jnp.float32)
    wslab = jnp.concatenate(
        [w1k_cf] + [jnp.concatenate([w2a_cf[i], padm], 0) for i in range(BLOCK_NUM)],
        axis=0)                                                      # ((1+BN)*D, D)

    # Pack biases and the sin/cos phase rows into one column slab.
    inner = jnp.arange(D) % (2 * FEAT_DIM)
    phase = jnp.where(inner >= FEAT_DIM, jnp.float32(np.pi / 2.0), 0.0)   # cos rows
    padv  = jnp.zeros((D - Dh,), jnp.float32)
    bparts = []
    for i in range(BLOCK_NUM):
        bparts += [b2a_f[i], padv, b2b_f[i]]
    bslab = jnp.concatenate(bparts + [phase])[:, None]               # ((2*BN+1)*D, 1)

    return {"wslab": wslab, "w2b": w2b_cf, "bslab": bslab,
            "w1l_cf": w1l_cf, "b1": b1}


# ----------------------------------------------------------------------------
# Pure-JAX reference (mirrors the torch module math with eval-mode BatchNorm)
# ----------------------------------------------------------------------------
def ref_forward(lc_xyz, lc_x, knn_xyz, knn_x, p):
    hi = jax.lax.Precision.HIGHEST
    D = OUT_DIM
    mean  = lc_xyz[:, :, None, :]
    delta = knn_xyz - mean
    std   = jnp.std(delta, ddof=1)
    xyz_n = delta / (std + 1e-5)
    B, G, K, C = knn_x.shape
    xcat = jnp.concatenate(
        [knn_x, jnp.broadcast_to(lc_x[:, :, None, :], (B, G, K, C))], axis=-1)
    y = jnp.einsum('bgkc,cd->bgkd', xcat, p["w1"], precision=hi)
    y = (y - p["bn1_m"]) / jnp.sqrt(p["bn1_v"] + BN_EPS) * p["bn1_g"] + p["bn1_b"]
    y = jnp.maximum(y, 0.0)
    dim_embed = ALPHA ** (jnp.arange(FEAT_DIM, dtype=jnp.float32) / FEAT_DIM)
    div = BETA * xyz_n[..., None] / dim_embed                 # (B,G,K,3,F)
    pe  = jnp.concatenate([jnp.sin(div), jnp.cos(div)], -1).reshape(B, G, K, D)
    w = (y + pe) * pe
    for i in range(BLOCK_NUM):
        h = jnp.einsum('bgkd,de->bgke', w, p["w2a"][i], precision=hi) + p["c2a_b"][i]
        h = (h - p["bn2a_m"][i]) / jnp.sqrt(p["bn2a_v"][i] + BN_EPS) * p["bn2a_g"][i] + p["bn2a_b"][i]
        h = jnp.maximum(h, 0.0)
        z = jnp.einsum('bgke,ed->bgkd', h, p["w2b"][i], precision=hi) + p["c2b_b"][i]
        z = (z - p["bn2b_m"][i]) / jnp.sqrt(p["bn2b_v"][i] + BN_EPS) * p["bn2b_g"][i] + p["bn2b_b"][i]
        w = jnp.maximum(z + w, 0.0)
    return jnp.transpose(w, (0, 3, 1, 2))


if __name__ == "__main__":
    key = jax.random.PRNGKey(0)
    kp, k1, k2, k3, k4 = jax.random.split(key, 5)

    B, G, K = 2, 16, 8
    lc_xyz  = jax.random.normal(k1, (B, G, 3), jnp.float32)
    lc_x    = jax.random.normal(k2, (B, G, C_IN), jnp.float32)
    knn_xyz = lc_xyz[:, :, None, :] + 0.1 * jax.random.normal(k3, (B, G, K, 3), jnp.float32)
    knn_x   = jax.random.normal(k4, (B, G, K, C_IN), jnp.float32)

    raw    = init_params(kp)
    folded = fold_params(raw)

    out = jax.jit(lga_forward)(lc_xyz, lc_x, knn_xyz, knn_x, folded)
    out = jax.block_until_ready(out)

    ref = ref_forward(lc_xyz, lc_x, knn_xyz, knn_x, raw)
    np.testing.assert_allclose(np.asarray(out), np.asarray(ref), rtol=2e-3, atol=2e-3)

    print("KERNEL_OK")
</pallas_src>

<mosaic_0001>
module attributes {stable_mosaic.version = 11 : i64} {
  func.func @_lga_kernel(%arg0: i32, %arg1: i32, %arg2: memref<1x128x24xf32, #tpu.memory_space<vmem>>, %arg3: memref<1x128x3xf32, #tpu.memory_space<vmem>>, %arg4: memref<1x48x16xf32, #tpu.memory_space<vmem>>, %arg5: memref<16x128xf32, #tpu.memory_space<vmem>>, %arg6: memref<72x24xf32, #tpu.memory_space<vmem>>, %arg7: memref<2x24x12xf32, #tpu.memory_space<vmem>>, %arg8: memref<120x1xf32, #tpu.memory_space<vmem>>, %arg9: memref<24x3xf32, #tpu.memory_space<vmem>>, %arg10: memref<1x24x128xf32, #tpu.memory_space<vmem>>) attributes {dimension_semantics = [#tpu.dimension_semantics<parallel>, #tpu.dimension_semantics<parallel>], iteration_bounds = array<i64: 2, 1>, scalar_prefetch = 0 : i64, scratch_operands = 0 : i64, tpu.core_type = #tpu.core_type<tc>, window_params = [{transform_indices = @transform_0, window_bounds = array<i64: 1, 128, 24>}, {transform_indices = @transform_1, window_bounds = array<i64: 1, 128, 3>}, {transform_indices = @transform_2, window_bounds = array<i64: 1, 48, 16>}, {pipeline_mode = #tpu.pipeline_mode<synchronous>, transform_indices = @transform_3, window_bounds = array<i64: 16, 128>}, {pipeline_mode = #tpu.pipeline_mode<synchronous>, transform_indices = @transform_4, window_bounds = array<i64: 72, 24>}, {pipeline_mode = #tpu.pipeline_mode<synchronous>, transform_indices = @transform_5, window_bounds = array<i64: 2, 24, 12>}, {pipeline_mode = #tpu.pipeline_mode<synchronous>, transform_indices = @transform_6, window_bounds = array<i64: 120, 1>}, {pipeline_mode = #tpu.pipeline_mode<synchronous>, transform_indices = @transform_7, window_bounds = array<i64: 24, 3>}, {transform_indices = @transform_8, window_bounds = array<i64: 1, 24, 128>}]} {
    %c0 = arith.constant 0 : index
    %c0_0 = arith.constant 0 : index
    %c0_1 = arith.constant 0 : index
    %0 = vector.load %arg2[%c0, %c0_0, %c0_1] : memref<1x128x24xf32, #tpu.memory_space<vmem>>, vector<1x128x24xf32>
    %1 = vector.shape_cast %0 : vector<1x128x24xf32> to vector<128x24xf32>
    %c0_2 = arith.constant 0 : index
    %c0_3 = arith.constant 0 : index
    %c0_4 = arith.constant 0 : index
    %2 = vector.load %arg3[%c0_2, %c0_3, %c0_4] : memref<1x128x3xf32, #tpu.memory_space<vmem>>, vector<1x128x3xf32>
    %3 = vector.shape_cast %2 : vector<1x128x3xf32> to vector<128x3xf32>
    %c0_5 = arith.constant 0 : index
    %c0_6 = arith.constant 0 : index
    %c0_7 = arith.constant 0 : index
    %4 = vector.load %arg4[%c0_5, %c0_6, %c0_7] : memref<1x48x16xf32, #tpu.memory_space<vmem>>, vector<1x48x16xf32>
    %5 = vector.shape_cast %4 : vector<1x48x16xf32> to vector<48x16xf32>
    %c0_8 = arith.constant 0 : index
    %c0_9 = arith.constant 0 : index
    %6 = vector.load %arg5[%c0_8, %c0_9] : memref<16x128xf32, #tpu.memory_space<vmem>>, vector<16x128xf32>
    %cst = arith.constant dense<0.000000e+00> : vector<48x128xf32>
    %7 = tpu.matmul %5, %6, %cst {dimension_numbers = #tpu.dot_dimension_numbers<[1], [0], [0], [1], [0, 0, 1, 1], [], []>} : vector<48x16xf32>, vector<16x128xf32>, vector<48x128xf32> -> vector<48x128xf32>
    %8 = vector.extract_strided_slice %7 {offsets = [0, 0], sizes = [24, 128], strides = [1, 1]} : vector<48x128xf32> to vector<24x128xf32>
    %9 = vector.extract_strided_slice %7 {offsets = [24, 0], sizes = [24, 128], strides = [1, 1]} : vector<48x128xf32> to vector<24x128xf32>
    %c0_10 = arith.constant 0 : index
    %c0_11 = arith.constant 0 : index
    %10 = vector.load %arg6[%c0_10, %c0_11] : memref<72x24xf32, #tpu.memory_space<vmem>>, vector<24x24xf32>
    %cst_12 = arith.constant dense<0.000000e+00> : vector<24x128xf32>
    %11 = tpu.matmul %10, %1, %cst_12 {dimension_numbers = #tpu.dot_dimension_numbers<[1], [1], [0], [0], [0, 0, 1, 0], [], []>} : vector<24x24xf32>, vector<128x24xf32>, vector<24x128xf32> -> vector<24x128xf32>
    %12 = arith.addf %11, %8 : vector<24x128xf32>
    %cst_13 = arith.constant 0.000000e+00 : f32
    %13 = vector.broadcast %cst_13 : f32 to vector<24x128xf32>
    %14 = arith.maximumf %12, %13 : vector<24x128xf32>
    %c0_14 = arith.constant 0 : index
    %c0_15 = arith.constant 0 : index
    %15 = vector.load %arg9[%c0_14, %c0_15] : memref<24x3xf32, #tpu.memory_space<vmem>>, vector<24x3xf32>
    %cst_16 = arith.constant dense<0.000000e+00> : vector<24x128xf32>
    %16 = tpu.matmul %15, %3, %cst_16 {dimension_numbers = #tpu.dot_dimension_numbers<[1], [1], [0], [0], [0, 0, 1, 0], [], []>} : vector<24x3xf32>, vector<128x3xf32>, vector<24x128xf32> -> vector<24x128xf32>
    %17 = arith.subf %16, %9 : vector<24x128xf32>
    %c96 = arith.constant 96 : index
    %c0_17 = arith.constant 0 : index
    %18 = vector.load %arg8[%c96, %c0_17] : memref<120x1xf32, #tpu.memory_space<vmem>>, vector<24x1xf32>
    %19 = vector.broadcast %18 : vector<24x1xf32> to vector<24x128xf32>
    %20 = arith.addf %17, %19 : vector<24x128xf32>
    %21 = math.sin %20 : vector<24x128xf32>
    %22 = arith.addf %14, %21 : vector<24x128xf32>
    %23 = arith.mulf %22, %21 : vector<24x128xf32>
    %c24 = arith.constant 24 : index
    %c0_18 = arith.constant 0 : index
    %24 = vector.load %arg6[%c24, %c0_18] : memref<72x24xf32, #tpu.memory_space<vmem>>, vector<12x24xf32>
    %c0_19 = arith.constant 0 : index
    %c0_20 = arith.constant 0 : index
    %25 = vector.load %arg8[%c0_19, %c0_20] : memref<120x1xf32, #tpu.memory_space<vmem>>, vector<12x1xf32>
    %c0_21 = arith.constant 0 : index
    %c0_22 = arith.constant 0 : index
    %c0_23 = arith.constant 0 : index
    %26 = vector.load %arg7[%c0_21, %c0_22, %c0_23] : memref<2x24x12xf32, #tpu.memory_space<vmem>>, vector<1x24x12xf32>
    %27 = vector.shape_cast %26 : vector<1x24x12xf32> to vector<24x12xf32>
    %c24_24 = arith.constant 24 : index
    %c0_25 = arith.constant 0 : index
    %28 = vector.load %arg8[%c24_24, %c0_25] : memref<120x1xf32, #tpu.memory_space<vmem>>, vector<24x1xf32>
    %cst_26 = arith.constant dense<0.000000e+00> : vector<12x128xf32>
    %29 = tpu.matmul %24, %23, %cst_26 {dimension_numbers = #tpu.dot_dimension_numbers<[1], [0], [0], [1], [0, 0, 1, 1], [], []>} : vector<12x24xf32>, vector<24x128xf32>, vector<12x128xf32> -> vector<12x128xf32>
    %30 = vector.broadcast %25 : vector<12x1xf32> to vector<12x128xf32>
    %31 = arith.addf %29, %30 : vector<12x128xf32>
    %cst_27 = arith.constant 0.000000e+00 : f32
    %32 = vector.broadcast %cst_27 : f32 to vector<12x128xf32>
    %33 = arith.maximumf %31, %32 : vector<12x128xf32>
    %cst_28 = arith.constant dense<0.000000e+00> : vector<24x128xf32>
    %34 = tpu.matmul %27, %33, %cst_28 {dimension_numbers = #tpu.dot_dimension_numbers<[1], [0], [0], [1], [0, 0, 1, 1], [], []>} : vector<24x12xf32>, vector<12x128xf32>, vector<24x128xf32> -> vector<24x128xf32>
    %35 = vector.broadcast %28 : vector<24x1xf32> to vector<24x128xf32>
    %36 = arith.addf %34, %35 : vector<24x128xf32>
    %37 = arith.addf %36, %23 : vector<24x128xf32>
    %cst_29 = arith.constant 0.000000e+00 : f32
    %38 = vector.broadcast %cst_29 : f32 to vector<24x128xf32>
    %39 = arith.maximumf %37, %38 : vector<24x128xf32>
    %c48 = arith.constant 48 : index
    %c0_30 = arith.constant 0 : index
    %40 = vector.load %arg6[%c48, %c0_30] : memref<72x24xf32, #tpu.memory_space<vmem>>, vector<12x24xf32>
    %c48_31 = arith.constant 48 : index
    %c0_32 = arith.constant 0 : index
    %41 = vector.load %arg8[%c48_31, %c0_32] : memref<120x1xf32, #tpu.memory_space<vmem>>, vector<12x1xf32>
    %c1 = arith.constant 1 : index
    %c0_33 = arith.constant 0 : index
    %c0_34 = arith.constant 0 : index
    %42 = vector.load %arg7[%c1, %c0_33, %c0_34] : memref<2x24x12xf32, #tpu.memory_space<vmem>>, vector<1x24x12xf32>
    %43 = vector.shape_cast %42 : vector<1x24x12xf32> to vector<24x12xf32>
    %c72 = arith.constant 72 : index
    %c0_35 = arith.constant 0 : index
    %44 = vector.load %arg8[%c72, %c0_35] : memref<120x1xf32, #tpu.memory_space<vmem>>, vector<24x1xf32>
    %cst_36 = arith.constant dense<0.000000e+00> : vector<12x128xf32>
    %45 = tpu.matmul %40, %39, %cst_36 {dimension_numbers = #tpu.dot_dimension_numbers<[1], [0], [0], [1], [0, 0, 1, 1], [], []>} : vector<12x24xf32>, vector<24x128xf32>, vector<12x128xf32> -> vector<12x128xf32>
    %46 = vector.broadcast %41 : vector<12x1xf32> to vector<12x128xf32>
    %47 = arith.addf %45, %46 : vector<12x128xf32>
    %cst_37 = arith.constant 0.000000e+00 : f32
    %48 = vector.broadcast %cst_37 : f32 to vector<12x128xf32>
    %49 = arith.maximumf %47, %48 : vector<12x128xf32>
    %cst_38 = arith.constant dense<0.000000e+00> : vector<24x128xf32>
    %50 = tpu.matmul %43, %49, %cst_38 {dimension_numbers = #tpu.dot_dimension_numbers<[1], [0], [0], [1], [0, 0, 1, 1], [], []>} : vector<24x12xf32>, vector<12x128xf32>, vector<24x128xf32> -> vector<24x128xf32>
    %51 = vector.broadcast %44 : vector<24x1xf32> to vector<24x128xf32>
    %52 = arith.addf %50, %51 : vector<24x128xf32>
    %53 = arith.addf %52, %39 : vector<24x128xf32>
    %cst_39 = arith.constant 0.000000e+00 : f32
    %54 = vector.broadcast %cst_39 : f32 to vector<24x128xf32>
    %55 = arith.maximumf %53, %54 : vector<24x128xf32>
    %c0_40 = arith.constant 0 : index
    %c0_41 = arith.constant 0 : index
    %c0_42 = arith.constant 0 : index
    %56 = vector.load %arg10[%c0_40, %c0_41, %c0_42] : memref<1x24x128xf32, #tpu.memory_space<vmem>>, vector<1x24x128xf32>
    %57 = vector.shape_cast %56 : vector<1x24x128xf32> to vector<24x128xf32>
    %58 = vector.shape_cast %55 : vector<24x128xf32> to vector<1x24x128xf32>
    tpu.vector_store %arg10[%c0_40, %c0_41, %c0_42], %58 {strides = array<i32>} : memref<1x24x128xf32, #tpu.memory_space<vmem>>, vector<1x24x128xf32>,
    return
  }
  func.func @transform_0(%arg0: i32, %arg1: i32) -> (i32, i32, i32) {
    %c0_i32 = arith.constant 0 : i32
    %c0_i32_0 = arith.constant 0 : i32
    return %arg0, %arg1, %c0_i32 : i32, i32, i32
  }
  func.func @transform_1(%arg0: i32, %arg1: i32) -> (i32, i32, i32) {
    %c0_i32 = arith.constant 0 : i32
    %c0_i32_0 = arith.constant 0 : i32
    return %arg0, %arg1, %c0_i32 : i32, i32, i32
  }
  func.func @transform_2(%arg0: i32, %arg1: i32) -> (i32, i32, i32) {
    %c0_i32 = arith.constant 0 : i32
    %c0_i32_0 = arith.constant 0 : i32
    return %arg0, %c0_i32, %arg1 : i32, i32, i32
  }
  func.func @transform_3(%arg0: i32, %arg1: i32) -> (i32, i32) {
    %c0_i32 = arith.constant 0 : i32
    %c0_i32_0 = arith.constant 0 : i32
    %c0_i32_1 = arith.constant 0 : i32
    return %c0_i32, %c0_i32_0 : i32, i32
  }
  func.func @transform_4(%arg0: i32, %arg1: i32) -> (i32, i32) {
    %c0_i32 = arith.constant 0 : i32
    %c0_i32_0 = arith.constant 0 : i32
    %c0_i32_1 = arith.constant 0 : i32
    return %c0_i32, %c0_i32_0 : i32, i32
  }
  func.func @transform_5(%arg0: i32, %arg1: i32) -> (i32, i32, i32) {
    %c0_i32 = arith.constant 0 : i32
    %c0_i32_0 = arith.constant 0 : i32
    %c0_i32_1 = arith.constant 0 : i32
    %c0_i32_2 = arith.constant 0 : i32
    return %c0_i32, %c0_i32_0, %c0_i32_1 : i32, i32, i32
  }
  func.func @transform_6(%arg0: i32, %arg1: i32) -> (i32, i32) {
    %c0_i32 = arith.constant 0 : i32
    %c0_i32_0 = arith.constant 0 : i32
    %c0_i32_1 = arith.constant 0 : i32
    return %c0_i32, %c0_i32_0 : i32, i32
  }
  func.func @transform_7(%arg0: i32, %arg1: i32) -> (i32, i32) {
    %c0_i32 = arith.constant 0 : i32
    %c0_i32_0 = arith.constant 0 : i32
    %c0_i32_1 = arith.constant 0 : i32
    return %c0_i32, %c0_i32_0 : i32, i32
  }
  func.func @transform_8(%arg0: i32, %arg1: i32) -> (i32, i32, i32) {
    %c0_i32 = arith.constant 0 : i32
    %c0_i32_0 = arith.constant 0 : i32
    return %arg0, %c0_i32, %arg1 : i32, i32, i32
  }
}

</mosaic_0001>

<bundles_post_ra>
// kernel: lga_forward.1
= control target key start
LH: loop header
LB: loop body
LE: loop exit
PB: predicated region body
PF: predicated region fallthrough
CT: control target
= control target key end

     0   :  { %s2265_s27 = smov 0   ;;  %s2267_s28 = smov 0   ;;  %s2740_s0 = inlined_call_operand.vmem [shape: f32[2,128,24], index: 0, kind: input, shape index: {}]   ;;  %s2741_s1 = inlined_call_operand.vmem [shape: f32[2,128,3], index: 1, kind: input, shape index: {}]   ;;  %s2742_s2 = inlined_call_operand.vmem [shape: f32[2,48,16], index: 2, kind: input, shape index: {}]   ;;  %s2743_s3 = inlined_call_operand.vmem [shape: f32[16,128], index: 3, kind: input, shape index: {}]   ;;  %s2744_s4 = inlined_call_operand.vmem [shape: f32[72,24], index: 4, kind: input, shape index: {}]   ;;  %s2745_s5 = inlined_call_operand.vmem [shape: f32[2,24,12], index: 5, kind: input, shape index: {}]   ;;  %s2746_s6 = inlined_call_operand.vmem [shape: f32[120,1], index: 6, kind: input, shape index: {}]   ;;  %s2747_s7 = inlined_call_operand.vmem [shape: f32[24,3], index: 7, kind: input, shape index: {}]   ;;  %s2748_s8 = inlined_call_operand.vmem [shape: f32[2,24,128], index: 8, kind: output, shape index: {}]  }
   0x1   :  { %s2269_s29 = smov 0  }
   0x2 LB: > { %s30_s30 = sadd.s32 1, %s2203_s28  ;;  %p1751_p0 = scmp.ge.s32.totalorder %s2207_s29, 1  ;;  %s2207_s29 = sphi %s2269_s29, %s18_s29   ;;  %s2203_s28 = sphi %s2267_s28, %s2758_s28   ;;  %s2199_s27 = sphi %s2265_s27, %s2757_s27  }
   0x3   : > { %p32_p1 = scmp.ge.s32.totalorder %s30_s30, 2  ;;  %p315_p2 = scmp.lt.s32.totalorder %s2207_s29, 3 }
   0x5   : > { %s2760_s30 = smov (%p32_p1, %s30_s30), 0  ;;  %p316_p3 = pnand %p1751_p0, %p315_p2 }
   0x6   : > { %v447_v0 = vld [vmem:[%s2743_s3] sm:$0xff] (!%p316_p3)  ;;  %v448_v1 = vld [vmem:[%s2743_s3 + $0x8] sm:$0xff] (!%p316_p3)  ;;  %p374_p4 = scmp.lt.s32.totalorder (!%p316_p3), %s2199_s27, 1  ;;  %v2209_v3 = vmov (!%p316_p3), 0.0|0.0   ;;  %vm566_vm0 = vcmask (!%p316_p3), 195584   ;;  %vm2210_vm1 = vmmov (!%p316_p3), 0  }
   0x7   : > { %319 = sbr.rel (%p316_p3) target bundleno = 1316 (0x524), region = 52  ;;  %v2038_v2 = vpack.c.bf16 (!%p316_p3), %v448_v1, %v447_v0  ;;  %2042 = vmatprep.subr.bf16.mxu1 (!%p316_p3), %v2209_v3  ;;  %v2211_v4 = vmov (!%p316_p3), 0.0   ;;  %v2212_v5 = vmov (!%p316_p3), 0   ;;  %v851_v6 = vld [vmem:[%s2746_s6 + $0x60] sm:$0xff] (!%p316_p3)  ;;  %vm2300_vm2 = vmpackc.low (!%p316_p3), %vm566_vm0, %vm566_vm0  ;;  %vm449_vm3 = vcmask (!%p316_p3), 130048   ;;  %v852_v8 = vld [vmem:[%s2746_s6 + $0x68] sm:$0xff] (!%p316_p3) }
   0x8   : > { %1944 = vmatprep.mubr.msk.f32.mxu1 (!%p316_p3), %vm2210_vm1, %v2211_v4  ;;  %2171 = vset.pattern.permute.xlu0 (!%p316_p3), %v2212_v5  ;;  %v853_v9 = vld [vmem:[%s2746_s6 + $0x70] sm:$0xff] (!%p316_p3)  ;;  %v1192_v10 = vld [vmem:[%s2746_s6] sm:$0xff] (!%p316_p3)  ;;  %vm710_vm4 = vcmask (!%p316_p3), 23552   ;;  %v1193_v19 = vld [vmem:[%s2746_s6 + $0x8] sm:$0xf] (!%p316_p3) }
   0x9   : > { %2039 = vmatprep.subr.bf16.mxu0 (!%p316_p3), %v2038_v2  ;;  %856 = vperm.xlu0 (!%p316_p3), %2171, %v851_v6   ;;  %vm2345_vm5 = vmpackc.low (!%p316_p3), %vm710_vm4, %vm710_vm4  ;;  %v1198_v24 = vld [vmem:[%s2746_s6 + $0x20] sm:$0xff] (!%p316_p3)  ;;  %v1410_v30 = vld [vmem:[%s2746_s6 + $0x30] sm:$0xff] (!%p316_p3) }
   0xa   : > { %2041 = vmatpush3.bf16.msra.mxu0 (!%p316_p3), %v2038_v2  ;;  %2172 = vset.pattern.permute.xlu1 (!%p316_p3), %v2212_v5  ;;  %v1197_v35 = vld [vmem:[%s2746_s6 + $0x18] sm:$0xff] (!%p316_p3)  ;;  %v1416_v37 = vld [vmem:[%s2746_s6 + $0x48] sm:$0xff] (!%p316_p3)  ;;  %v1417_v47 = vld [vmem:[%s2746_s6 + $0x50] sm:$0xff] (!%p316_p3) }
   0xb   : > { %2074 = vmatprep.subr.bf16.mxu0 (!%p316_p3), %v2209_v3  ;;  %866 = vperm.xlu1 (!%p316_p3), %2172, %v853_v9   ;;  %v1199_v38 = vld [vmem:[%s2746_s6 + $0x28] sm:$0xff] (!%p316_p3)  ;;  %v1418_v42 = vld [vmem:[%s2746_s6 + $0x58] sm:$0xff] (!%p316_p3)  ;;  %v707_v7 = vld [vmem:[%s2747_s7] sm:$0xff] (!%p316_p3) }
   0xc   : > { %v1411_v43 = vld [vmem:[%s2746_s6 + $0x38] sm:$0xf] (!%p316_p3) }
   0xd   : > { %861 = vperm.xlu0 (!%p316_p3), %2171, %v852_v8  }
   0xe   : > { %s2762_s27 = smov (!%p374_p4, %s2199_s27), 1 }
   0xf   : > { %s1831_s15 = sshll.u32 %s2762_s27, 7  ;;  %s2122_s16 = smul.u32 48, %s2762_s27  ;;  %1202 = vperm.xlu1 %2172, %v1192_v10  }
  0x10   : > { %s2308_s19 = scalar_lea.vmem %s2740_s0, %s1831_s15  ;;  %s2313_s22 = scalar_lea.vmem %s2741_s1, %s1831_s15 }
  0x11   : > { %v409_v11 = vld [vmem:[%s2308_s19] sm:$0xff]  ;;  %v410_v12 = vld [vmem:[%s2308_s19 + $0x8] sm:$0xff]  ;;  %s2330_s13 = scalar_lea.vmem %s2742_s2, %s2122_s16  ;;  %v411_v21 = vld [vmem:[%s2308_s19 + $0x10] sm:$0xff]  ;;  %1207 = vperm.xlu0 %2171, %v1193_v19   ;;  %s2123_s12 = smul.u32 24, %s2762_s27 }
  0x12   : > { %v425_v13 = vld [vmem:[%s2313_s22] sm:$0xff]  ;;  %v2043_v14 = vpack.c.bf16 %v410_v12, %v409_v11  ;;  %v442_v16 = vld [vmem:[%s2330_s13 + $0x8] sm:$0xff]  ;;  %v412_v22 = vld [vmem:[%s2308_s19 + $0x18] sm:$0xff] }
  0x13   : > { %v441_v15 = vld [vmem:[%s2330_s13] sm:$0xff]  ;;  %v426_v17 = vld [vmem:[%s2313_s22 + $0x8] sm:$0xff]  ;;  %v2047_v23 = vpack.c.bf16 %v412_v22, %v411_v21  ;;  %v427_v25 = vld [vmem:[%s2313_s22 + $0x10] sm:$0xff]  ;;  %1295 = vperm.xlu1 %2172, %v1197_v35   ;;  %s408_s15 = scalar_lea.vmem %s2748_s8, %s2123_s12 }
  0x14   : > { %1903 = vmatprep.mubr.msk.f32.mxu0 %vm449_vm3, %v441_v15  ;;  %2045 = vmatpush3.bf16.xpose.msk.msra.mxu1 %vm2300_vm2, %v2043_v14  ;;  %v2075_v18 = vpack.c.bf16 %v426_v17, %v425_v13  ;;  %v428_v26 = vld [vmem:[%s2313_s22 + $0x18] sm:$0xff]  ;;  %v443_v27 = vld [vmem:[%s2330_s13 + $0x10] sm:$0xff]  ;;  %v413_v31 = vld [vmem:[%s2308_s19 + $0x20] sm:$0xff] }
  0x15   : > { %1904 = vmatmul.mubr.msk.f32.vlgmr.msra.gmra.mrb[0].mxu0 %vm449_vm3, %v442_v16  ;;  %2046 = vmatprep.subr.bf16.mxu1 %v2209_v3  ;;  %v2079_v28 = vpack.c.bf16 %v428_v26, %v427_v25  ;;  %v444_v29 = vld [vmem:[%s2330_s13 + $0x18] sm:$0xff]  ;;  %v414_v32 = vld [vmem:[%s2308_s19 + $0x28] sm:$0xff]  ;;  %v445_v33 = vld [vmem:[%s2330_s13 + $0x20] sm:$0xff] }
  0x16   : > { %2077 = vmatpush3.bf16.xpose.msk.msra.mxu0 %vm2345_vm5, %v2075_v18  ;;  %1300 = vperm.xlu0 %2171, %v1198_v24   ;;  %v446_v34 = vld [vmem:[%s2330_s13 + $0x28] sm:$0xff]  ;;  %v2051_v36 = vpack.c.bf16 %v414_v32, %v413_v31  ;;  %v429_v39 = vld [vmem:[%s2313_s22 + $0x20] sm:$0xff]  ;;  %v415_v44 = vld [vmem:[%s2308_s19 + $0x30] sm:$0xff] }
  0x17   : > { %2078 = vmatprep.subr.bf16.mxu0 %v2209_v3  ;;  %1906 = vmatprep.mubr.msk.f32.mxu0 %vm449_vm3, %v443_v27  ;;  %v430_v40 = vld [vmem:[%s2313_s22 + $0x28] sm:$0xff]  ;;  %v416_v45 = vld [vmem:[%s2308_s19 + $0x38] sm:$0xff]  ;;  %v431_v48 = vld [vmem:[%s2313_s22 + $0x30] sm:$0xff] }
  0x18   : > { %1305 = vperm.xlu1 %2172, %v1199_v38   ;;  %v2083_v41 = vpack.c.bf16 %v430_v40, %v429_v39  ;;  %v2055_v46 = vpack.c.bf16 %v416_v45, %v415_v44  ;;  %v432_v49 = vld [vmem:[%s2313_s22 + $0x38] sm:$0xff]  ;;  %v417_v51 = vld [vmem:[%s2308_s19 + $0x40] sm:$0xff]  ;;  %v418_v52 = vld [vmem:[%s2308_s19 + $0x48] sm:$0xff] }
  0x19   : > { %1907 = vmatmul.mubr.msk.f32.gmra.mrb[2].mxu0 %vm449_vm3, %v444_v29  ;;  %v2087_v50 = vpack.c.bf16 %v432_v49, %v431_v48  ;;  %v2059_v53 = vpack.c.bf16 %v418_v52, %v417_v51  ;;  %v433_v54 = vld [vmem:[%s2313_s22 + $0x40] sm:$0xff]  ;;  %v434_v55 = vld [vmem:[%s2313_s22 + $0x48] sm:$0xff]  ;;  %v419_v57 = vld [vmem:[%s2308_s19 + $0x50] sm:$0xff] }
  0x1a   : > { %1909 = vmatprep.mubr.msk.f32.mxu0 %vm449_vm3, %v445_v33  ;;  %1421 = vperm.xlu0 %2171, %v1410_v30   ;;  %v2091_v56 = vpack.c.bf16 %v434_v55, %v433_v54  ;;  %v420_v58 = vld [vmem:[%s2308_s19 + $0x58] sm:$0xff]  ;;  %v435_v60 = vld [vmem:[%s2313_s22 + $0x50] sm:$0xff]  ;;  %v421_v63 = vld [vmem:[%s2308_s19 + $0x60] sm:$0xff] }
  0x1b   : > { %v2063_v59 = vpack.c.bf16 %v420_v58, %v419_v57  ;;  %v436_v61 = vld [vmem:[%s2313_s22 + $0x58] sm:$0xff]  ;;  %v422_v0 = vld [vmem:[%s2308_s19 + $0x68] sm:$0xff]  ;;  %v437_v2 = vld [vmem:[%s2313_s22 + $0x60] sm:$0xff] }
  0x1c   : > { %2049 = vmatpush3.bf16.xpose.msk.msra.mxu1 %vm2300_vm2, %v2047_v23  ;;  %1426 = vperm.xlu1 %2172, %v1411_v43   ;;  %v2095_v62 = vpack.c.bf16 %v436_v61, %v435_v60  ;;  %v2067_v1 = vpack.c.bf16 %v422_v0, %v421_v63  ;;  %v438_v5 = vld [vmem:[%s2313_s22 + $0x68] sm:$0xff]  ;;  %v423_v8 = vld [vmem:[%s2308_s19 + $0x70] sm:$0xff]  ;;  %v424_v9 = vld [vmem:[%s2308_s19 + $0x78] sm:$0xff] }
  0x1d   : > { %2050 = vmatprep.subr.bf16.mxu1 %v2209_v3  ;;  %1910 = vmatmul.mubr.msk.f32.gmra.mrb[4].mxu0 %vm449_vm3, %v446_v34  ;;  %v2099_v6 = vpack.c.bf16 %v438_v5, %v437_v2  ;;  %v2071_v10 = vpack.c.bf16 %v424_v9, %v423_v8  ;;  %v439_v11 = vld [vmem:[%s2313_s22 + $0x70] sm:$0xff]  ;;  %v440_v12 = vld [vmem:[%s2313_s22 + $0x78] sm:$0xff]  ;;  %v563_v14 = vld [vmem:[%s2744_s4] sm:$0xff] }
  0x1e   : > { %2081 = vmatpush3.bf16.xpose.msk.msra.mxu0 %vm2345_vm5, %v2079_v28  ;;  %1985 = vmatprep.mubr.msk.f32.mxu0 %vm2210_vm1, %v2211_v4  ;;  %v2103_v13 = vpack.c.bf16 %v440_v12, %v439_v11  ;;  %v564_v15 = vld [vmem:[%s2744_s4 + $0x8] sm:$0xff]  ;;  %v565_v16 = vld [vmem:[%s2744_s4 + $0x10] sm:$0xff]  ;;  %v1190_v25 = vld [vmem:[%s2744_s4 + $0x18] sm:$0xff]  ;;  %v2214_v12 = vmov 2475754826  }
  0x1f   : > { %2082 = vmatprep.subr.bf16.mxu0 %v2209_v3  ;;  %1514 = vperm.xlu0 %2171, %v1416_v37   ;;  %v708_v17 = vld [vmem:[%s2747_s7 + $0x8] sm:$0xff]  ;;  %v709_v18 = vld [vmem:[%s2747_s7 + $0x10] sm:$0xff] }
  0x20   : > { %1519 = vperm.xlu1 %2172, %v1417_v47  }
  0x23   : > { %1524 = vperm.xlu0 %2171, %v1418_v42  }
  0x24   : > { %2053 = vmatpush3.bf16.xpose.msk.msra.mxu1 %vm2300_vm2, %v2051_v36 }
  0x25   : > { %2054 = vmatprep.subr.bf16.mxu1 %v2209_v3 }
  0x26   : > { %2085 = vmatpush3.bf16.xpose.msk.msra.mxu0 %vm2345_vm5, %v2083_v41 }
  0x27   : > { %2086 = vmatprep.subr.bf16.mxu0 %v2209_v3 }
  0x2c   : > { %2057 = vmatpush3.bf16.xpose.msk.msra.mxu1 %vm2300_vm2, %v2055_v46 }
  0x2d   : > { %2058 = vmatprep.subr.bf16.mxu1 %v2209_v3 }
  0x2e   : > { %2089 = vmatpush3.bf16.xpose.msk.msra.mxu0 %vm2345_vm5, %v2087_v50 }
  0x2f   : > { %2090 = vmatprep.subr.bf16.mxu0 %v2209_v3 }
  0x34   : > { %2061 = vmatpush3.bf16.xpose.msk.msra.mxu1 %vm2300_vm2, %v2059_v53 }
  0x35   : > { %2062 = vmatprep.subr.bf16.mxu1 %v2209_v3 }
  0x36   : > { %2093 = vmatpush3.bf16.xpose.msk.msra.mxu0 %vm2345_vm5, %v2091_v56 }
  0x37   : > { %2094 = vmatprep.subr.bf16.mxu0 %v2209_v3 }
  0x3c   : > { %2065 = vmatpush3.bf16.xpose.msk.msra.mxu1 %vm2300_vm2, %v2063_v59 }
  0x3d   : > { %2066 = vmatprep.subr.bf16.mxu1 %v2209_v3 }
  0x3e   : > { %2097 = vmatpush3.bf16.xpose.msk.msra.mxu0 %vm2345_vm5, %v2095_v62 }
  0x3f   : > { %2098 = vmatprep.subr.bf16.mxu0 %v2209_v3 }
  0x44   : > { %2069 = vmatpush3.bf16.xpose.msk.msra.mxu1 %vm2300_vm2, %v2067_v1 }
  0x45   : > { %2070 = vmatprep.subr.bf16.mxu1 %v2209_v3 }
  0x46   : > { %2101 = vmatpush3.bf16.xpose.msk.msra.mxu0 %vm2345_vm5, %v2099_v6 }
  0x47   : > { %2102 = vmatprep.subr.bf16.mxu0 %v2209_v3 }
  0x4c   : > { %2073 = vmatpush3.bf16.xpose.msk.msra.mxu1 %vm2300_vm2, %v2071_v10  ;;  %v2213_v10 = vmov 683565275  }
  0x4e   : > { %2105 = vmatpush3.bf16.xpose.msk.msra.mxu0 %vm2345_vm5, %v2103_v13 }
  0x53   : > { %1945 = vmatmul.mubr.msk.f32.vlgmr.msra.gmra.mrb[0].mxu1 %vm566_vm0, %v563_v14 }
  0x54   : > { %1947 = vmatprep.mubr.msk.f32.mxu1 %vm2210_vm1, %v2211_v4 }
  0x55   : > { %1986 = vmatmul.mubr.msk.f32.vlgmr.msra.gmra.mrb[6].mxu0 %vm710_vm4, %v707_v7 }
  0x56   : > { %1988 = vmatprep.mubr.msk.f32.mxu0 %vm2210_vm1, %v2211_v4 }
  0x57   : > { %1948 = vmatmul.mubr.msk.f32.gmra.mrb[2].mxu1 %vm566_vm0, %v564_v15  ;;  %v2215_v15 = vmov 2131351028  }
  0x58   : > { %1950 = vmatprep.mubr.msk.f32.mxu1 %vm2210_vm1, %v2211_v4 }
  0x59   : > { %1989 = vmatmul.mubr.msk.f32.gmra.mrb[8].mxu0 %vm710_vm4, %v708_v17 }
  0x5a   : > { %1991 = vmatprep.mubr.msk.f32.mxu0 %vm2210_vm1, %v2211_v4 }
  0x5b   : > { %1951 = vmatmul.mubr.msk.f32.gmra.mrb[4].mxu1 %vm566_vm0, %v565_v16  ;;  %v2216_v16 = vmov 2102212464  }
  0x5d   : > { %1992 = vmatmul.mubr.msk.f32.gmra.mrb[10].mxu0 %vm710_vm4, %v709_v18  ;;  %v2217_v18 = vmov 920167782  }
  0x5e   : > { %2000 = vmatprep.mubr.msk.f32.mxu0 %vm566_vm0, %v1190_v25  ;;  %v2218_v25 = vmov 1326507024  }
  0x88   : > { %v857_v29 = vpop.permute.xlu0 %856 }
  0x8a   : > { %v867_v53 = vpop.permute.xlu1 %866 }
  0x8c   : > { %v862_v45 = vpop.permute.xlu0 %861 }
  0xe8   : > { %v1905_v19 = vpop.f32.mrb[0].mxu0 }
  0xe9   : > { %v534_v20 = vpop.f32.mrb[1].mxu0 }
  0xec   : > { %v1908_v21 = vpop.f32.mrb[2].mxu0 }
  0xed   : > { %v544_v22 = vpop.f32.mrb[3].mxu0 }
  0xf0   : > { %v1911_v23 = vpop.f32.mrb[4].mxu0 }
  0xf1   : > { %v554_v24 = vpop.f32.mrb[5].mxu0 }
 0x126   : > { %v690_v26 = vpop.f32.mrb[0].mxu1 }
 0x127   : > { %v2491_v27 = vadd.f32 %v690_v26, %v534_v20  ;;  %v1946_v28 = vpop.f32.mrb[1].mxu1 }
 0x128   : > { %v834_v31 = vpop.f32.mrb[6].mxu0 }
 0x129   : > { %v848_v33 = vsub.f32 %v834_v31, %v1908_v21  ;;  %v1987_v34 = vpop.f32.mrb[7].mxu0 }
 0x12a   : > { %v695_v30 = vpop.f32.mrb[2].mxu1 }
 0x12b   : > { %v2493_v32 = vadd.f32 %v1905_v19, %v695_v30  ;;  %v1949_v35 = vpop.f32.mrb[3].mxu1  ;;  %v2495_v36 = vadd.f32 %v857_v29, %v848_v33 }
 0x12c   : > { %v839_v38 = vpop.f32.mrb[8].mxu0 }
 0x12d   : > { %v872_v39 = vand.u32 2147483647, %v2495_v36  ;;  %v875_v40 = vand.u32 2139095040, %v2495_v36  ;;  %v1990_v42 = vpop.f32.mrb[9].mxu0  ;;  %v849_v44 = vsub.f32 %v839_v38, %v554_v24 }
 0x12e   : > { %v700_v37 = vpop.f32.mrb[4].mxu1 }
 0x12f   : > { %v2499_v41 = vadd.f32 %v700_v37, %v544_v22  ;;  %v1952_v43 = vpop.f32.mrb[5].mxu1  ;;  %v876_v46 = vshrl.u32 %v875_v40, 23  ;;  %v879_v47 = vand.u32 8388607, %v872_v39  ;;  %v2503_v48 = vadd.f32 %v862_v45, %v849_v44 }
 0x130   : > { %v844_v49 = vpop.f32.mrb[10].mxu0 }
 0x131   : > { %v1802_v50 = vadd.s32 4294967169, %v876_v46  ;;  %v850_v51 = vsub.f32 %v844_v49, %v1911_v23  ;;  %v1993_v52 = vpop.f32.mrb[11].mxu0  ;;  %v976_v54 = vand.u32 2147483647, %v2503_v48  ;;  %v979_v55 = vand.u32 2139095040, %v2503_v48 }
 0x132   : > { %v880_v58 = vor.u32 8388608, %v879_v47 }
 0x133   : > { %v882_v56 = vadd.s32 1, %v1802_v50  ;;  %v2507_v57 = vadd.f32 %v867_v53, %v850_v51  ;;  %v980_v59 = vshrl.u32 %v979_v55, 23  ;;  %v983_v60 = vand.u32 8388607, %v976_v54 }
 0x134   : > { %v2512_v2 = vshll.u32 %v880_v58, 8 }
 0x135   : > { %vm883_vm6 = vcmp.gt.s32.totalorder %v882_v56, 0  ;;  %v1083_v61 = vand.u32 2139095040, %v2507_v57  ;;  %v1806_v63 = vadd.s32 4294967169, %v980_v59  ;;  %v984_v5 = vor.u32 8388608, %v983_v60 }
 0x136   : > { %v884_v62 = vsel %vm883_vm6, %v882_v56, 0  ;;  %v1080_v6 = vand.u32 2147483647, %v2507_v57 }
 0x137   : > { %v885_v0 = vshrl.u32 %v884_v62, 5  ;;  %v886_v1 = vand.u32 31, %v884_v62  ;;  %v1084_v8 = vshrl.u32 %v1083_v61, 23  ;;  %v986_v14 = vadd.s32 1, %v1806_v63 }
 0x138   : > { %v2537_v53 = vand.u32 8388607, %v1080_v6  ;;  %v2548_v62 = vshll.u32 %v984_v5, 8 }
 0x139   : > { %v887_v9 = vsub.s32 32, %v886_v1  ;;  %v889_v11 = vshll.u32 %v2213_v10, %v886_v1  ;;  %v892_v13 = vshll.u32 %v2214_v12, %v886_v1  ;;  %v895_v7 = vshll.u32 %v2215_v15, %v886_v1 }
 0x13a   : > { %v898_v17 = vshll.u32 %v2216_v16, %v886_v1  ;;  %v901_v19 = vshll.u32 %v2217_v18, %v886_v1  ;;  %vm904_vm7 = vcmp.lt.s32.totalorder %v885_v0, 1  ;;  %vm905_vm8 = vcmp.lt.s32.totalorder %v885_v0, 2 }
 0x13b   : > { %v890_v20 = vshrl.u32 %v2214_v12, %v887_v9  ;;  %v893_v21 = vshrl.u32 %v2215_v15, %v887_v9  ;;  %v896_v22 = vshrl.u32 %v2216_v16, %v887_v9  ;;  %v888_v23 = vshrl.u32 %v2213_v10, %v887_v9 }
 0x13c   : > { %v899_v24 = vshrl.u32 %v2217_v18, %v887_v9  ;;  %v902_v26 = vshrl.u32 %v2218_v25, %v887_v9  ;;  %vm906_vm9 = vcmp.lt.s32.totalorder %v885_v0, 3  ;;  %vm987_vm10 = vcmp.gt.s32.totalorder %v986_v14, 0 }
 0x13d   : > { %v891_v28 = vor.u32 %v890_v20, %v889_v11  ;;  %v894_v29 = vor.u32 %v893_v21, %v892_v13  ;;  %v897_v30 = vor.u32 %v896_v22, %v895_v7  ;;  %vm907_vm11 = vcmp.lt.s32.totalorder %v885_v0, 4 }
 0x13e   : > { %v900_v31 = vor.u32 %v899_v24, %v898_v17  ;;  %v903_v33 = vor.u32 %v902_v26, %v901_v19  ;;  %v988_v34 = vsel %vm987_vm10, %v986_v14, 0  ;;  %v1810_v63 = vadd.s32 4294967169, %v1084_v8 }
 0x13f   : > { %v908_v35 = vsel %vm904_vm7, %v888_v23, %v891_v28  ;;  %v909_v37 = vsel %vm907_vm11, %v897_v30, 2102212464  ;;  %v912_v38 = vsel %vm904_vm7, %v891_v28, %v894_v29  ;;  %v916_v40 = vsel %vm904_vm7, %v894_v29, %v897_v30 }
 0x140   : > { %v910_v42 = vsel %vm906_vm9, %v894_v29, %v909_v37  ;;  %v913_v43 = vsel %vm907_vm11, %v900_v31, 920167782  ;;  %v917_v44 = vsel %vm907_vm11, %v903_v33, 1326507024  ;;  %v989_v45 = vshrl.u32 %v988_v34, 5 }
 0x141   : > { %v911_v46 = vsel %vm905_vm8, %v908_v35, %v910_v42  ;;  %v914_v47 = vsel %vm906_vm9, %v897_v30, %v913_v43  ;;  %v918_v49 = vsel %vm906_vm9, %v900_v31, %v917_v44  ;;  %v990_v50 = vand.u32 31, %v988_v34 }
 0x142   : > { %v915_v51 = vsel %vm905_vm8, %v912_v38, %v914_v47  ;;  %v919_v52 = vsel %vm905_vm8, %v916_v40, %v918_v49  ;;  %v927_v60 = vmul.u32 %v2512_v2, %v911_v46  ;;  %vm1008_vm12 = vcmp.lt.s32.totalorder %v989_v45, 1 }
 0x143   : > { %v2540_v55 = vmul.u32.u64.low %v2512_v2, %v919_v52  ;;  %v2541_v56 = vmul.u32.u64.high %v2512_v2, %v919_v52, %v2540_v55  ;;  %v2544_v58 = vmul.u32.u64.low %v2512_v2, %v915_v51  ;;  %v2545_v59 = vmul.u32.u64.high %v2512_v2, %v915_v51, %v2544_v58 }
 0x144   : > { %v991_v61 = vsub.s32 32, %v990_v50  ;;  %v993_v0 = vshll.u32 %v2213_v10, %v990_v50  ;;  %v996_v1 = vshll.u32 %v2214_v12, %v990_v50  ;;  %v999_v9 = vshll.u32 %v2215_v15, %v990_v50 }
 0x145   : > { %v1002_v7 = vshll.u32 %v2216_v16, %v990_v50  ;;  %vm929_vm13 = vc.u32 %v2541_v56, %v2544_v58  ;;  %v930_v2 = vadd.s32 1, %v2545_v59  ;;  %v1005_v8 = vshll.u32 %v2217_v18, %v990_v50 }
 0x146   : > { %v994_v11 = vshrl.u32 %v2214_v12, %v991_v61  ;;  %v997_v13 = vshrl.u32 %v2215_v15, %v991_v61  ;;  %v1000_v14 = vshrl.u32 %v2216_v16, %v991_v61  ;;  %v1003_v5 = vshrl.u32 %v2217_v18, %v991_v61 }
 0x147   : > { %v1006_v21 = vshrl.u32 %v2218_v25, %v991_v61  ;;  %v931_v22 = vsel %vm929_vm13, %v930_v2, %v2545_v59  ;;  %vm1009_vm14 = vcmp.lt.s32.totalorder %v989_v45, 2  ;;  %vm1011_vm15 = vcmp.lt.s32.totalorder %v989_v45, 4 }
 0x148   : > { %v995_v17 = vor.u32 %v994_v11, %v993_v0  ;;  %v998_v19 = vor.u32 %v997_v13, %v996_v1  ;;  %v1001_v20 = vor.u32 %v1000_v14, %v999_v9  ;;  %v1004_v23 = vor.u32 %v1003_v5, %v1002_v7 }
 0x149   : > { %v932_v24 = vadd.s32 %v931_v22, %v927_v60  ;;  %v992_v26 = vshrl.u32 %v2213_v10, %v991_v61  ;;  %v1007_v28 = vor.u32 %v1006_v21, %v1005_v8  ;;  %vm1010_vm2 = vcmp.lt.s32.totalorder %v989_v45, 3 }
 0x14a   : > { %v1013_v29 = vsel %vm1011_vm15, %v1001_v20, 2102212464  ;;  %v1016_v30 = vsel %vm1008_vm12, %v995_v17, %v998_v19  ;;  %v1017_v31 = vsel %vm1011_vm15, %v1004_v23, 920167782  ;;  %v1020_v33 = vsel %vm1008_vm12, %v998_v19, %v1001_v20 }
 0x14b   : > { %v933_v34 = vadd.s32 536870912, %v932_v24  ;;  %v1012_v35 = vsel %vm1008_vm12, %v992_v26, %v995_v17  ;;  %v1018_v37 = vsel %vm1010_vm2, %v1001_v20, %v1017_v31  ;;  %v1021_v38 = vsel %vm1011_vm15, %v1007_v28, 1326507024 }
 0x14c   : > { %v1014_v40 = vsel %vm1010_vm2, %v998_v19, %v1013_v29  ;;  %v1019_v42 = vsel %vm1009_vm14, %v1016_v30, %v1018_v37  ;;  %v1022_v43 = vsel %vm1010_vm2, %v1004_v23, %v1021_v38  ;;  %v1090_v44 = vadd.s32 1, %v1810_v63 }
 0x14d   : > { %v2568_v46 = vshrl.u32 %v933_v34, 30  ;;  %v1023_v47 = vsel %vm1009_vm14, %v1020_v33, %v1022_v43  ;;  %v2572_v49 = vmul.u32.u64.low %v2548_v62, %v1019_v42  ;;  %v2573_v50 = vmul.u32.u64.high %v2548_v62, %v1019_v42, %v2572_v49 }
 0x14e   : > { %v2577_v51 = vmul.u32.u64.low %v2548_v62, %v1023_v47  ;;  %v2578_v52 = vmul.u32.u64.high %v2548_v62, %v1023_v47, %v2577_v51  ;;  %vm1091_vm3 = vcmp.gt.s32.totalorder %v1090_v44, 0  ;;  %v1015_v59 = vsel %vm1009_vm14, %v1012_v35, %v1014_v40 }
 0x14f   : > { %v935_v55 = vshll.u32 %v2568_v46, 30  ;;  %v1092_v60 = vsel %vm1091_vm3, %v1090_v44, 0  ;;  %v928_v63 = vadd.s32 %v2544_v58, %v2541_v56  ;;  %v1034_v1 = vadd.s32 1, %v2573_v50 }
 0x150   : > { %v1094_v61 = vand.u32 31, %v1092_v60  ;;  %v1088_v9 = vor.u32 8388608, %v2537_v53  ;;  %v1031_v11 = vmul.u32 %v2548_v62, %v1015_v59  ;;  %vm1033_vm4 = vc.u32 %v2578_v52, %v2572_v49 }
 0x151   : > { %v936_v0 = vsub.s32 %v932_v24, %v935_v55  ;;  %v1093_v13 = vshrl.u32 %v1092_v60, 5  ;;  %v1035_v45 = vsel %vm1033_vm4, %v1034_v1, %v2573_v50  ;;  %vm874_vm12 = vcmp.lt.s32.totalorder %v2495_v36, 0 }
 0x152   : > { %v1095_v14 = vsub.s32 32, %v1094_v61  ;;  %v1097_v2 = vshll.u32 %v2213_v10, %v1094_v61  ;;  %v1100_v5 = vshll.u32 %v2214_v12, %v1094_v61  ;;  %v1036_v56 = vadd.s32 %v1035_v45, %v1031_v11 }
 0x153   : > { %v938_v7 = vsub.s32 0, %v936_v0  ;;  %v1103_v53 = vshll.u32 %v2215_v15, %v1094_v61  ;;  %v1106_v19 = vshll.u32 %v2216_v16, %v1094_v61  ;;  %v1109_v24 = vshll.u32 %v2217_v18, %v1094_v61 }
 0x154   : > { %v1098_v58 = vshrl.u32 %v2214_v12, %v1095_v14  ;;  %v1101_v8 = vshrl.u32 %v2215_v15, %v1095_v14  ;;  %v1104_v17 = vshrl.u32 %v2216_v16, %v1095_v14  ;;  %v1107_v20 = vshrl.u32 %v2217_v18, %v1095_v14 }
 0x155   : > { %v1803_v62 = vmin.u32 %v938_v7, %v936_v0  ;;  %v1037_v21 = vadd.s32 536870912, %v1036_v56  ;;  %v1110_v12 = vshrl.u32 %v2218_v25, %v1095_v14  ;;  %v1096_v15 = vshrl.u32 %v2213_v10, %v1095_v14 }
 0x156   : > { %v1099_v22 = vor.u32 %v1098_v58, %v1097_v2  ;;  %v1102_v23 = vor.u32 %v1101_v8, %v1100_v5  ;;  %v1105_v28 = vor.u32 %v1104_v17, %v1103_v53  ;;  %v1108_v29 = vor.u32 %v1107_v20, %v1106_v19 }
 0x157   : > { %v940_v26 = vclz %v1803_v62  ;;  %v2599_v30 = vshrl.u32 %v1037_v21, 30  ;;  %vm1112_vm5 = vcmp.lt.s32.totalorder %v1093_v13, 1  ;;  %v1128_v31 = vshll.u32 %v1088_v9, 8 }
 0x158   : > { %v1111_v16 = vor.u32 %v1110_v12, %v1109_v24  ;;  %vm1114_vm6 = vcmp.lt.s32.totalorder %v1093_v13, 3  ;;  %vm1115_vm7 = vcmp.lt.s32.totalorder %v1093_v13, 4  ;;  %v1120_v18 = vsel %vm1112_vm5, %v1099_v22, %v1102_v23 }
 0x159   : > { %v1804_v33 = vadd.s32 4294967294, %v940_v26  ;;  %v1039_v34 = vshll.u32 %v2599_v30, 30  ;;  %v1117_v35 = vsel %vm1115_vm7, %v1105_v28, 2102212464  ;;  %v1121_v37 = vsel %vm1115_vm7, %v1108_v29, 920167782 }
 0x15a   : > { %vm1113_vm9 = vcmp.lt.s32.totalorder %v1093_v13, 2  ;;  %v1116_v25 = vsel %vm1112_vm5, %v1096_v15, %v1099_v22  ;;  %v1122_v10 = vsel %vm1114_vm6, %v1105_v28, %v1121_v37  ;;  %v1124_v43 = vsel %vm1112_vm5, %v1102_v23, %v1105_v28 }
 0x15b   : > { %vm1805_vm8 = vcmp.lt.s32.totalorder %v1804_v33, 0  ;;  %v1040_v40 = vsub.s32 %v1036_v56, %v1039_v34  ;;  %v1123_v42 = vsel %vm1113_vm9, %v1120_v18, %v1122_v10  ;;  %v1118_v50 = vsel %vm1114_vm6, %v1102_v23, %v1117_v35 }
 0x15c   : > { %v943_v38 = vsel %vm1805_vm8, 0, %v1804_v33  ;;  %v1125_v51 = vsel %vm1115_vm7, %v1111_v16, 1326507024  ;;  %v2613_v60 = vmul.u32.u64.low %v1128_v31, %v1123_v42  ;;  %v2614_v61 = vmul.u32.u64.high %v1128_v31, %v1123_v42, %v2613_v60 }
 0x15d   : > { %v944_v44 = vsub.s32 32, %v943_v38  ;;  %v948_v47 = vsub.s32 4294967266, %v943_v38  ;;  %v1042_v55 = vsub.s32 0, %v1040_v40  ;;  %v1126_v59 = vsel %vm1114_vm6, %v1108_v29, %v1125_v51 }
 0x15e   : > { %v945_v1 = vshll.u32 %v936_v0, %v943_v38  ;;  %v1127_v14 = vsel %vm1113_vm9, %v1124_v43, %v1126_v59  ;;  %v1119_v58 = vsel %vm1113_vm9, %v1116_v25, %v1118_v50  ;;  %v1138_v53 = vadd.s32 1, %v2614_v61 }
 0x15f   : > { %v946_v9 = vshrl.u32 %v928_v63, %v944_v44  ;;  %v949_v11 = vadd.s32 127, %v948_v47  ;;  %v1807_v7 = vmin.u32 %v1042_v55, %v1040_v40  ;;  %v1135_v19 = vmul.u32 %v1128_v31, %v1119_v58 }
 0x160   : > { %v2618_v45 = vmul.u32.u64.low %v1128_v31, %v1127_v14  ;;  %v2619_v2 = vmul.u32.u64.high %v1128_v31, %v1127_v14, %v2618_v45  ;;  %v958_v13 = vsub.s32 4, %v2568_v46  ;;  %v1032_v24 = vadd.s32 %v2572_v49, %v2578_v52 }
 0x161   : > { %v947_v5 = vor.u32 %v946_v9, %v945_v1  ;;  %v950_v56 = vshll.u32 %v949_v11, 23  ;;  %v1044_v8 = vclz %v1807_v7  ;;  %vm873_vm13 = vcmp.le.f32.partialorder %v872_v39, 0.7853982 }
 0x162   : > { %vm1137_vm10 = vc.u32 %v2619_v2, %v2613_v60  ;;  %v959_v35 = vsel %vm874_vm12, %v958_v13, %v2568_v46  ;;  %v1062_v39 = vsub.s32 4, %v2599_v30  ;;  %vm978_vm14 = vcmp.lt.s32.totalorder %v2503_v48, 0 }
 0x163   : > { %v951_v62 = vor.u32 4788187, %v950_v56  ;;  %v1808_v17 = vadd.s32 4294967294, %v1044_v8  ;;  %v954_v0 = vcvt.s32.f32 %v947_v5  ;;  %v1139_v20 = vsel %vm1137_vm10, %v1138_v53, %v2614_v61 }
 0x164   : > { %v1140_v21 = vadd.s32 %v1139_v20, %v1135_v19  ;;  %v961_v38 = vsel %vm873_vm13, 0, %v959_v35  ;;  %v1063_v59 = vsel %vm978_vm14, %v1062_v39, %v2599_v30  ;;  %vm2642_vm15 = vcmp.le.f32.partialorder %v976_v54, 0.7853982 }
 0x165   : > { %v952_v63 = vand.u32 2147483647, %v951_v62  ;;  %vm1809_vm11 = vcmp.lt.s32.totalorder %v1808_v17, 0  ;;  %v965_v44 = vadd.s32 3, %v961_v38  ;;  %v704_v14 = vmax.f32 %v2491_v27, 0.0 }
 0x166   : > { %v1047_v23 = vsel %vm1809_vm11, 0, %v1808_v17  ;;  %v1141_v29 = vadd.s32 536870912, %v1140_v21  ;;  %v1136_v45 = vadd.s32 %v2613_v60, %v2619_v2  ;;  %v1065_v54 = vsel %vm2642_vm15, 0, %v1063_v59 }
 0x167   : > { %v955_v22 = vmul.f32 %v954_v0, %v952_v63  ;;  %v1048_v26 = vsub.s32 32, %v1047_v23  ;;  %v1052_v28 = vsub.s32 4294967266, %v1047_v23  ;;  %v1049_v15 = vshll.u32 %v1040_v40, %v1047_v23 }
 0x168   : > { %v2630_v16 = vshrl.u32 %v1141_v29, 30  ;;  %v966_v55 = vand.u32 3, %v965_v44  ;;  %vm964_vm5 = vweird.f32 %v2495_v36  ;;  %v1069_v60 = vadd.s32 3, %v1065_v54 }
 0x169   : > { %v956_v12 = vxor.u32 2147483648, %v955_v22  ;;  %v1050_v31 = vshrl.u32 %v1032_v24, %v1048_v26  ;;  %v1053_v33 = vadd.s32 127, %v1052_v28  ;;  %vm1082_vm10 = vcmp.lt.s32.totalorder %v2507_v57, 0 }
 0x16a   : > { %v1143_v37 = vshll.u32 %v2630_v16, 30  ;;  %vm971_vm3 = vcmp.eq.s32.totalorder %v966_v55, 2  ;;  %vm968_vm4 = vcmp.eq.s32.totalorder %v966_v55, 0  ;;  %vm967_vm6 = vcmp.lt.s32.totalorder %v966_v55, 2 }
 0x16b   : > { %v957_v34 = vsel %vm874_vm12, %v956_v12, %v955_v22  ;;  %v1051_v49 = vor.u32 %v1050_v31, %v1049_v15  ;;  %v1054_v52 = vshll.u32 %v1053_v33, 23  ;;  %v1070_v13 = vand.u32 3, %v1069_v60 }
 0x16c   : > { %v960_v18 = vsel %vm873_vm13, %v2495_v36, %v957_v34  ;;  %v1144_v10 = vsub.s32 %v1140_v21, %v1143_v37  ;;  %v1166_v33 = vsub.s32 4, %v2630_v16  ;;  %vm1068_vm11 = vweird.f32 %v2503_v48 }
 0x16d   : > { %2173 = vcosq.f32 %v960_v18  ;;  %v1055_v25 = vor.u32 4788187, %v1054_v52  ;;  %v1058_v42 = vcvt.s32.f32 %v1051_v49  ;;  %vm1075_vm7 = vcmp.eq.s32.totalorder %v1070_v13, 2 }
 0x16e   : > { %2175 = vsinq.f32 %v960_v18  ;;  %v1146_v43 = vsub.s32 0, %v1144_v10  ;;  %vm1072_vm8 = vcmp.eq.s32.totalorder %v1070_v13, 0  ;;  %vm1071_vm9 = vcmp.lt.s32.totalorder %v1070_v13, 2 }
 0x16f   : > { %v1056_v40 = vand.u32 2147483647, %v1055_v25  ;;  %v705_v49 = vmax.f32 %v2493_v32, 0.0  ;;  %vm1081_vm12 = vcmp.le.f32.partialorder %v1080_v6, 0.7853982 }
 0x170   : > { %v1811_v50 = vmin.u32 %v1146_v43, %v1144_v10 }
 0x171   : > { %v1059_v47 = vmul.f32 %v1058_v42, %v1056_v40 }
 0x172   : > { %v1148_v51 = vclz %v1811_v50 }
 0x173   : > { %v1060_v46 = vxor.u32 2147483648, %v1059_v47 }
 0x174   : > { %v1812_v9 = vadd.s32 4294967294, %v1148_v51  ;;  %v706_v51 = vmax.f32 %v2499_v41, 0.0  ;;  %v1208_v41 = vpop.permute.xlu0 %1207 }
 0x175   : > { %v1061_v1 = vsel %vm978_vm14, %v1060_v46, %v1059_v47 }
 0x176   : > { %v1064_v7 = vsel %vm2642_vm15, %v2503_v48, %v1061_v1  ;;  %vm1813_vm2 = vcmp.lt.s32.totalorder %v1812_v9, 0 }
 0x177   : > { %v2174_v11 = vpop.eup %2173  ;;  %2177 = vcosq.f32 %v1064_v7  ;;  %v1151_v56 = vsel %vm1813_vm2, 0, %v1812_v9  ;;  %vm1172_vm2 = vweird.f32 %v2507_v57  ;;  %v1191_v9 = vld [vmem:[%s2744_s4 + $0x20] sm:$0xf] }
 0x178   : > { %v2176_v5 = vpop.eup %2175  ;;  %v972_v30 = vxor.u32 2147483648, %v2174_v11  ;;  %2179 = vsinq.f32 %v1064_v7  ;;  %v1152_v8 = vsub.s32 32, %v1151_v56  ;;  %v1156_v27 = vsub.s32 4294967266, %v1151_v56 }
 0x179   : > { %v969_v58 = vxor.u32 2147483648, %v2176_v5  ;;  %v1153_v2 = vshll.u32 %v1144_v10, %v1151_v56  ;;  %v1167_v10 = vsel %vm1082_vm10, %v1166_v33, %v2630_v16  ;;  %v1409_v33 = vld [vmem:[%s2744_s4 + $0x38] sm:$0xf] }
 0x17a   : > { %v973_v53 = vsel %vm971_vm3, %v972_v30, %v2176_v5  ;;  %v1154_v17 = vshrl.u32 %v1136_v45, %v1152_v8  ;;  %v1157_v19 = vadd.s32 127, %v1156_v27  ;;  %v1169_v43 = vsel %vm1081_vm12, 0, %v1167_v10  ;;  %v1195_v8 = vld [vmem:[%s2745_s5 + $0x8] sm:$0xff]  ;;  %v1196_v27 = vld [vmem:[%s2745_s5 + $0x10] sm:$0xff] }
 0x17b   : > { %v970_v62 = vsel %vm968_vm4, %v2174_v11, %v969_v58  ;;  %v1173_v44 = vadd.s32 3, %v1169_v43  ;;  %vm1318_vm3 = vcmask 1043456   ;;  %vm2219_vm4 = vmmov 1   ;;  %v1194_v58 = vld [vmem:[%s2745_s5] sm:$0xff] }
 0x17c   : > { %v974_v63 = vsel %vm967_vm6, %v970_v62, %v973_v53  ;;  %v1155_v20 = vor.u32 %v1154_v17, %v1153_v2  ;;  %v1158_v21 = vshll.u32 %v1157_v19, 23  ;;  %vm1308_vm6 = vcmask 97280   ;;  %v1408_v53 = vld [vmem:[%s2744_s4 + $0x30] sm:$0xff]  ;;  %v1301_v19 = vpop.permute.xlu0 %1300 }
 0x17d   : > { %v975_v0 = vsel %vm964_vm5, nan, %v974_v63  ;;  %v1174_v48 = vand.u32 3, %v1173_v44  ;;  %vm2675_vm5 = vmpackc.low %vm1318_vm3, %vm2219_vm4  ;;  %2022 = vmatprep.mubr.msk.f32.mxu1 %vm566_vm0, %v1408_v53 }
 0x17e   : > { %v1184_v22 = vadd.f32 %v975_v0, %v704_v14  ;;  %v1159_v23 = vor.u32 4788187, %v1158_v21  ;;  %v1162_v29 = vcvt.s32.f32 %v1155_v20 }
 0x17f   : > { %vm1179_vm13 = vcmp.eq.s32.totalorder %v1174_v48, 2  ;;  %vm1176_vm14 = vcmp.eq.s32.totalorder %v1174_v48, 0  ;;  %vm1175_vm15 = vcmp.lt.s32.totalorder %v1174_v48, 2 }
 0x180   : > { %v2655_v24 = vmul.f32 %v1184_v22, %v975_v0  ;;  %v1160_v28 = vand.u32 2147483647, %v1159_v23 }
 0x181   : > { %v2178_v26 = vpop.eup %2177 }
 0x182   : > { %v2180_v12 = vpop.eup %2179  ;;  %v1076_v36 = vxor.u32 2147483648, %v2178_v26  ;;  %v1163_v15 = vmul.f32 %v1162_v29, %v1160_v28 }
 0x183   : > { %v1073_v31 = vxor.u32 2147483648, %v2180_v12 }
 0x184   : > { %v1077_v34 = vsel %vm1075_vm7, %v1076_v36, %v2180_v12  ;;  %v1164_v35 = vxor.u32 2147483648, %v1163_v15 }
 0x185   : > { %v1074_v18 = vsel %vm1072_vm8, %v2178_v26, %v1073_v31 }
 0x186   : > { %v1078_v52 = vsel %vm1071_vm9, %v1074_v18, %v1077_v34  ;;  %v1165_v37 = vsel %vm1082_vm10, %v1164_v35, %v1163_v15  ;;  %v1422_v35 = vpop.permute.xlu0 %1421 }
 0x187   : > { %v1079_v25 = vsel %vm1068_vm11, nan, %v1078_v52  ;;  %v1168_v40 = vsel %vm1081_vm12, %v2507_v57, %v1165_v37  ;;  %v1203_v57 = vpop.permute.xlu1 %1202 }
 0x188   : > { %v1185_v38 = vadd.f32 %v1079_v25, %v705_v49  ;;  %2181 = vcosq.f32 %v1168_v40 }
 0x189   : > { %2183 = vsinq.f32 %v1168_v40  ;;  %v1822_v40 = vld [vmem:[%s2745_s5 + $0x28] sm:$0xff] }
 0x18a   : > { %v1188_v42 = vmul.f32 %v1185_v38, %v1079_v25  ;;  %v1821_v38 = vld [vmem:[%s2745_s5 + $0x20] sm:$0xff] }
 0x18b   : > { %v1296_v62 = vpop.permute.xlu1 %1295 }
 0x18c   : > { %v2106_v32 = vpack.c.bf16 %v1188_v42, %v2655_v24 }
 0x18e   : > { %2107 = vmatprep.subr.bf16.mxu0 %v2106_v32 }
 0x18f   : > { %2109 = vmatpush3.bf16.msra.mxu0 %v2106_v32  ;;  %v1306_v23 = vpop.permute.xlu1 %1305 }
 0x192   : > { %v2182_v39 = vpop.eup %2181 }
 0x193   : > { %v2184_v47 = vpop.eup %2183  ;;  %v1180_v50 = vxor.u32 2147483648, %v2182_v39 }
 0x194   : > { %v1177_v46 = vxor.u32 2147483648, %v2184_v47 }
 0x195   : > { %v1181_v6 = vsel %vm1179_vm13, %v1180_v50, %v2184_v47 }
 0x196   : > { %v1178_v16 = vsel %vm1176_vm14, %v2182_v39, %v1177_v46 }
 0x197   : > { %v1182_v55 = vsel %vm1175_vm15, %v1178_v16, %v1181_v6 }
 0x198   : > { %v1183_v59 = vsel %vm1172_vm2, nan, %v1182_v55 }
 0x199   : > { %v1186_v61 = vadd.f32 %v1183_v59, %v706_v51 }
 0x19b   : > { %v1189_v1 = vmul.f32 %v1186_v61, %v1183_v59 }
 0x19d   : > { %1998 = vmatprep.subr.mxu0 %v1189_v1 }
 0x19e   : > { %1999 = vmatpush3.msra.mxu0 %v1189_v1 }
 0x19f   : > { %2001 = vmatmul.mubr.msk.f32.vlgmr.msra.gmra.mrb[12].mxu0 %vm566_vm0, %v1191_v9  ;;  %2110 = vmatprep.subr.bf16.mxu0 %v2209_v3 }
 0x1a0   : > { %2007 = vmatprep.mubr.msk.f32.mxu0 %vm2210_vm1, %v2211_v4 }
 0x272   : > { %v2002_v11 = vpop.f32.mrb[12].mxu0 }
 0x273   : > { %v1288_v14 = vadd.f32 %v2002_v11, %v1208_v41  ;;  %v1282_v7 = vpop.f32.mrb[13].mxu0 }
 0x274   : > { %v1283_v45 = vadd.f32 %v1282_v7, %v1203_v57 }
 0x275   : > { %v1292_v5 = vmax.f32 %v1288_v14, 0.0 }
 0x276   : > { %v1291_v30 = vmax.f32 %v1283_v45, 0.0 }
 0x278   : > { %v2111_v56 = vpack.c.bf16 %v1292_v5, %v1291_v30 }
 0x27a   : > { %2113 = vmatpush3.bf16.msk.msra.mxu0 %vm2675_vm5, %v2111_v56 }
 0x27d   : > { %2008 = vmatmul.mubr.msk.f32.vlgmr.msra.gmra.mrb[14].mxu0 %vm1308_vm6, %v1194_v58 }
 0x27e   : > { %2010 = vmatprep.mubr.msk.f32.mxu0 %vm2210_vm1, %v2211_v4 }
 0x281   : > { %2011 = vmatmul.mubr.msk.f32.gmra.mrb[16].mxu0 %vm1308_vm6, %v1195_v8 }
 0x282   : > { %2013 = vmatprep.mubr.msk.f32.mxu0 %vm2210_vm1, %v2211_v4 }
 0x285   : > { %2014 = vmatmul.mubr.msk.f32.gmra.mrb[18].mxu0 %vm1308_vm6, %v1196_v27 }
 0x350   : > { %v1388_v60 = vpop.f32.mrb[14].mxu0 }
 0x351   : > { %v1389_v2 = vadd.f32 %v1388_v60, %v1296_v62  ;;  %v2009_v17 = vpop.f32.mrb[15].mxu0 }
 0x353   : > { %v1402_v0 = vadd.f32 %v1389_v2, %v2655_v24  ;;  %v1427_v24 = vpop.permute.xlu1 %1426 }
 0x354   : > { %v1393_v63 = vpop.f32.mrb[16].mxu0 }
 0x355   : > { %v1394_v20 = vadd.f32 %v1393_v63, %v1301_v19  ;;  %v2012_v21 = vpop.f32.mrb[17].mxu0  ;;  %v1405_v26 = vmax.f32 %v1402_v0, 0.0 }
 0x357   : > { %v1403_v22 = vadd.f32 %v1394_v20, %v1188_v42  ;;  %v1515_v42 = vpop.permute.xlu0 %1514  ;;  %v1520_v39 = vpop.permute.xlu1 %1519 }
 0x358   : > { %v1398_v13 = vpop.f32.mrb[18].mxu0 }
 0x359   : > { %v1406_v28 = vmax.f32 %v1403_v22, 0.0  ;;  %v1399_v29 = vadd.f32 %v1398_v13, %v1306_v23  ;;  %v2015_v12 = vpop.f32.mrb[19].mxu0 }
 0x35b   : > { %v1404_v36 = vadd.f32 %v1399_v29, %v1189_v1  ;;  %v2114_v15 = vpack.c.bf16 %v1406_v28, %v1405_v26  ;;  %v1525_v16 = vpop.permute.xlu0 %1524 }
 0x35d   : > { %v1407_v31 = vmax.f32 %v1404_v36, 0.0  ;;  %2115 = vmatprep.subr.bf16.mxu1 %v2114_v15 }
 0x35e   : > { %2117 = vmatpush3.bf16.msra.mxu1 %v2114_v15 }
 0x35f   : > { %2020 = vmatprep.subr.mxu1 %v1407_v31 }
 0x362   : > { %2021 = vmatpush3.msra.mxu1 %v1407_v31 }
 0x363   : > { %2023 = vmatmul.mubr.msk.f32.vlgmr.msra.gmra.mrb[6].mxu1 %vm566_vm0, %v1409_v33  ;;  %2118 = vmatprep.subr.bf16.mxu1 %v2209_v3  ;;  %v1820_v3 = vld [vmem:[%s2745_s5 + $0x18] sm:$0xff] }
 0x364   : > { %2029 = vmatprep.mubr.msk.f32.mxu1 %vm2210_vm1, %v2211_v4 }
 0x436   : > { %v2024_v34 = vpop.f32.mrb[6].mxu1 }
 0x437   : > { %v1507_v18 = vadd.f32 %v2024_v34, %v1427_v24  ;;  %v1501_v49 = vpop.f32.mrb[7].mxu1 }
 0x438   : > { %v1502_v52 = vadd.f32 %v1501_v49, %v1422_v35 }
 0x439   : > { %v1511_v37 = vmax.f32 %v1507_v18, 0.0 }
 0x43a   : > { %v1510_v25 = vmax.f32 %v1502_v52, 0.0 }
 0x43c   : > { %v2119_v10 = vpack.c.bf16 %v1511_v37, %v1510_v25 }
 0x43e   : > { %2121 = vmatpush3.bf16.msk.msra.mxu1 %vm2675_vm5, %v2119_v10 }
 0x441   : > { %2030 = vmatmul.mubr.msk.f32.vlgmr.msra.gmra.mrb[8].mxu1 %vm1308_vm6, %v1820_v3 }
 0x442   : > { %2032 = vmatprep.mubr.msk.f32.mxu1 %vm2210_vm1, %v2211_v4 }
 0x445   : > { %2033 = vmatmul.mubr.msk.f32.gmra.mrb[10].mxu1 %vm1308_vm6, %v1821_v38 }
 0x446   : > { %2035 = vmatprep.mubr.msk.f32.mxu1 %vm2210_vm1, %v2211_v4 }
 0x449   : > { %2036 = vmatmul.mubr.msk.f32.gmra.mrb[12].mxu1 %vm1308_vm6, %v1822_v40 }
 0x514   : > { %v1605_v43 = vpop.f32.mrb[8].mxu1 }
 0x515   : > { %v1606_v32 = vadd.f32 %v1605_v43, %v1515_v42  ;;  %v2031_v44 = vpop.f32.mrb[9].mxu1 }
 0x517   : > { %v1619_v48 = vadd.f32 %v1606_v32, %v1405_v26 }
 0x518   : > { %v1610_v47 = vpop.f32.mrb[10].mxu1 }
 0x519   : > { %v1622_v50 = vmax.f32 %v1619_v48, 0.0  ;;  %v1611_v4 = vadd.f32 %v1610_v47, %v1520_v39  ;;  %v2034_v46 = vpop.f32.mrb[11].mxu1 }
 0x51b   : > { %1625 = vst [vmem:[%s408_s15] sm:$0xff] %v1622_v50  ;;  %v1620_v6 = vadd.f32 %v1611_v4, %v1406_v28 }
 0x51c   : > { %v1615_v51 = vpop.f32.mrb[12].mxu1 }
 0x51d   : > { %v1623_v55 = vmax.f32 %v1620_v6, 0.0  ;;  %v1616_v59 = vadd.f32 %v1615_v51, %v1525_v16  ;;  %v2037_v61 = vpop.f32.mrb[13].mxu1 }
 0x51f   : > { %1626 = vst [vmem:[%s408_s15 + $0x8] sm:$0xff] %v1623_v55  ;;  %v1621_v1 = vadd.f32 %v1616_v59, %v1407_v31 }
 0x521   : > { %v1624_v9 = vmax.f32 %v1621_v1, 0.0 }
 0x523   : > { %1627 = vst [vmem:[%s408_s15 + $0x10] sm:$0xff] %v1624_v9 }
 0x524 PF: > { %s18_s29 = sadd.s32 1, %s2207_s29   ;;  %s2757_s27 = smov %s2203_s28 }
 0x525   : > { %p15_p5 = scmp.ge.s32.totalorder %s18_s29, 4   ;;  %s2758_s28 = smov %s2760_s30 }
 0x527   :  { %17 = sbr.rel (!%p15_p5) target bundleno = 2 (0x2), region = 89 }

</bundles_post_ra>
